<compile_context>
chip_gen: v5e
topology: v5e:2x2
jax: 0.10.0
libtpu: 0.0.40
codegen_flags: <defaults>
</compile_context>

<pallas_src>
import math

import jax
import jax.numpy as jnp
from jax.experimental import pallas as pl
from jax.experimental.pallas import tpu as pltpu

LANE = 128      # TPU vreg lane width (last dim)
SUBLANE = 8     # TPU vreg sublane width (second-to-last dim)


def _round_up(x, m):
    return ((x + m - 1) // m) * m


def _tpu_generation_defaults():
    """Per-generation (tb, vmem_limit_bytes, multi_tensorcore) defaults."""
    kind = ""
    try:
        kind = jax.devices()[0].device_kind.lower()
    except Exception:
        pass
    if ("v5" in kind) or ("v6" in kind):
        # 128 MiB physical VMEM per TC, single TensorCore per chip.
        return 1024, 100 * 1024 * 1024, False
    # Conservative default (covers v7x: 64 MiB physical VMEM, 2 TCs/chip).
    return 512, 48 * 1024 * 1024, True


# ---------------------------------------------------------------------------
# Kernel
# ---------------------------------------------------------------------------
def decoder_mlp_kernel(x_ref, w1_ref, b1_ref, w2_ref, b2_ref, out_ref):
    # x_ref : (TB, F)    native-dtype batch tile (cast to bf16 here, on-chip)
    # w1_ref: (F, Hp)    bf16 first-layer weight, (in, out) layout, zero-padded
    # b1_ref: (1, Hp)    f32
    # w2_ref: (Hp, Lp)   bf16 second-layer weight, (in, out) layout, zero-padded
    # b2_ref: (1, Lp)    f32
    # out_ref: (TB, Lp)  lane-dense output tile (Lp multiple of 128)
    x = x_ref[...].astype(w1_ref.dtype)
    h = jnp.dot(x, w1_ref[...], preferred_element_type=jnp.float32)
    h = jnp.maximum(h + b1_ref[...], 0.0)                 # bias + ReLU in f32
    z = jnp.dot(h.astype(w2_ref.dtype), w2_ref[...],
                preferred_element_type=jnp.float32) + b2_ref[...]
    out_ref[...] = jax.nn.sigmoid(z).astype(out_ref.dtype)


# ---------------------------------------------------------------------------
# Parameter preparation (call ONCE at model init, reuse across forwards)
# ---------------------------------------------------------------------------
def prepare_decoder_mlp_params(W1, b1, W2, b2, compute_dtype=jnp.bfloat16):
    """Transpose to (in, out), zero-pad H/L to multiples of 128, cast weights.

    W1: (H, F) PyTorch Linear weight layout (out, in)  -- lin_encoder.weight
    b1: (H,)
    W2: (L, H)                                         -- lin_out.weight
    b2: (L,)
    Padded hidden units carry zero weight and zero bias -> relu(0)=0 and zero
    W2 rows, so they contribute nothing; padded latent columns are sliced off
    in the apply wrapper.
    """
    H, F = W1.shape
    L = W2.shape[0]
    Hp = _round_up(H, LANE)
    Lp = _round_up(L, LANE)

    w1_t = jnp.zeros((F, Hp), compute_dtype).at[:, :H].set(
        W1.T.astype(compute_dtype))
    b1_p = jnp.zeros((1, Hp), jnp.float32).at[:, :H].set(
        b1.astype(jnp.float32).reshape(1, H))
    w2_t = jnp.zeros((Hp, Lp), compute_dtype).at[:H, :L].set(
        W2.T.astype(compute_dtype))
    b2_p = jnp.zeros((1, Lp), jnp.float32).at[:, :L].set(
        b2.astype(jnp.float32).reshape(1, L))

    return {"w1_t": w1_t, "b1_p": b1_p, "w2_t": w2_t, "b2_p": b2_p,
            "F": F, "H": H, "L": L, "Hp": Hp, "Lp": Lp}


# ---------------------------------------------------------------------------
# Forward (apply)
# ---------------------------------------------------------------------------
def decoder_mlp_apply(x, params, *, tb=None, out_dtype=None,
                      vmem_limit_bytes=None, return_padded=False):
    """Fused DecoderMLP forward using prepared params.

    x: (B, F) inputs (native dtype, streamed into the kernel as-is).
    Returns sigmoid(relu(x @ W1.T + b1) @ W2.T + b2), shape (B, L)
    (or the padded (Bp, Lp) buffer if return_padded=True so downstream
    consumers can avoid an extra slice copy).
    """
    tb_def, vmem_def, multi_tc = _tpu_generation_defaults()
    if tb is None:
        tb = tb_def
    if vmem_limit_bytes is None:
        vmem_limit_bytes = vmem_def
    if out_dtype is None:
        out_dtype = x.dtype            # v5e tip: pass jnp.bfloat16 to halve stores

    B, F = x.shape
    assert F == params["F"], "input feature dim mismatch with prepared params"
    Hp, Lp, L = params["Hp"], params["Lp"], params["L"]
    w1_t, b1_p = params["w1_t"], params["b1_p"]
    w2_t, b2_p = params["w2_t"], params["b2_p"]

    # --- batch tiling ------------------------------------------------------
    B8 = _round_up(B, SUBLANE)
    tb_eff = min(tb, B8)
    # Guarantee >= 2 grid steps (so both v7x TensorCores get work) whenever it
    # costs no extra batch padding.
    if multi_tc and tb_eff >= B8 and B8 >= 2 * SUBLANE and B8 % (2 * SUBLANE) == 0:
        tb_eff = B8 // 2
    Bp = _round_up(B8, tb_eff)

    # Pad batch rows only when needed (no dtype conversion pass over x; padded
    # rows are sliced off below, so their garbage-free zero values are inert).
    x_in = x if Bp == B else jnp.pad(x, ((0, Bp - B), (0, 0)))

    cost = pl.CostEstimate(
        flops=2 * Bp * (F * Hp + Hp * Lp),
        transcendentals=Bp * Lp,                      # sigmoid exp
        bytes_accessed=(x_in.size * x_in.dtype.itemsize
                        + w1_t.size * w1_t.dtype.itemsize
                        + w2_t.size * w2_t.dtype.itemsize
                        + b1_p.size * b1_p.dtype.itemsize
                        + b2_p.size * b2_p.dtype.itemsize
                        + Bp * Lp * jnp.dtype(out_dtype).itemsize),
    )

    out = pl.pallas_call(
        decoder_mlp_kernel,
        out_shape=jax.ShapeDtypeStruct((Bp, Lp), out_dtype),
        grid_spec=pltpu.PrefetchScalarGridSpec(
            num_scalar_prefetch=0,
            grid=(Bp // tb_eff,),
            in_specs=[
                pl.BlockSpec((tb_eff, F), lambda i: (i, 0)),   # x: tiled batch
                pl.BlockSpec((F, Hp), lambda i: (0, 0)),       # W1^T resident
                pl.BlockSpec((1, Hp), lambda i: (0, 0)),       # b1
                pl.BlockSpec((Hp, Lp), lambda i: (0, 0)),      # W2^T resident
                pl.BlockSpec((1, Lp), lambda i: (0, 0)),       # b2
            ],
            out_specs=pl.BlockSpec((tb_eff, Lp), lambda i: (i, 0)),
        ),
        compiler_params=pltpu.CompilerParams(
            dimension_semantics=("parallel",),
            vmem_limit_bytes=vmem_limit_bytes,
        ),
        cost_estimate=cost,
    )(x_in, w1_t, b1_p, w2_t, b2_p)

    if return_padded:
        return out
    return out[:B, :L]


def decoder_mlp(x, W1, b1, W2, b2, **kwargs):
    """One-shot convenience wrapper. For repeated forwards, hoist
    prepare_decoder_mlp_params() out of the call path and use
    decoder_mlp_apply() directly."""
    params = prepare_decoder_mlp_params(W1, b1, W2, b2)
    return decoder_mlp_apply(x, params, **kwargs)


# ---------------------------------------------------------------------------
# References
# ---------------------------------------------------------------------------
def decoder_mlp_reference(x, W1, b1, W2, b2, compute_dtype=jnp.bfloat16):
    """Pure-JAX reference mirroring the kernel's bf16-operand / f32-accum math."""
    xc = x.astype(compute_dtype)
    h = jnp.dot(xc, W1.T.astype(compute_dtype),
                preferred_element_type=jnp.float32) + b1.astype(jnp.float32)
    h = jnp.maximum(h, 0.0)
    z = jnp.dot(h.astype(compute_dtype), W2.T.astype(compute_dtype),
                preferred_element_type=jnp.float32) + b2.astype(jnp.float32)
    return jax.nn.sigmoid(z).astype(x.dtype)


def decoder_mlp_reference_f32(x, W1, b1, W2, b2):
    h = jnp.maximum(x @ W1.T + b1, 0.0)
    return jax.nn.sigmoid(h @ W2.T + b2)


if __name__ == "__main__":
    # Small shapes consistent with the module's forward.
    B, in_features, hidden_dim, latent_dim = 16, 16, 32, 8

    key = jax.random.PRNGKey(0)
    kx, kw1, kb1, kw2, kb2 = jax.random.split(key, 5)

    # Deterministic init mirroring PyTorch Linear default:
    # W, b ~ U(-1/sqrt(fan_in), 1/sqrt(fan_in)); W stored as (out, in).
    bound1 = 1.0 / math.sqrt(in_features)
    W1 = jax.random.uniform(kw1, (hidden_dim, in_features), jnp.float32,
                            minval=-bound1, maxval=bound1)
    b1 = jax.random.uniform(kb1, (hidden_dim,), jnp.float32,
                            minval=-bound1, maxval=bound1)

    bound2 = 1.0 / math.sqrt(hidden_dim)
    W2 = jax.random.uniform(kw2, (latent_dim, hidden_dim), jnp.float32,
                            minval=-bound2, maxval=bound2)
    b2 = jax.random.uniform(kb2, (latent_dim,), jnp.float32,
                            minval=-bound2, maxval=bound2)

    x = jax.random.normal(kx, (B, in_features), jnp.float32)

    # Prepare weights once (hoisted out of the forward path), then apply.
    params = prepare_decoder_mlp_params(W1, b1, W2, b2)
    out = decoder_mlp_apply(x, params)
    out = jax.block_until_ready(out)
    assert out.shape == (B, latent_dim)

    # Tight check against the bf16-matmul / f32-accum reference.
    ref = decoder_mlp_reference(x, W1, b1, W2, b2)
    assert jnp.allclose(out, ref, atol=1e-4, rtol=1e-4), "mismatch vs bf16 reference"

    # Sanity check against the pure-f32 module semantics (bf16 operand noise only).
    ref32 = decoder_mlp_reference_f32(x, W1, b1, W2, b2)
    assert jnp.allclose(out, ref32, atol=3e-2, rtol=3e-2), "mismatch vs f32 reference"

    print("KERNEL_OK")
</pallas_src>

<mosaic_0001>
module attributes {stable_mosaic.version = 11 : i64} {
  func.func @decoder_mlp_kernel(%arg0: i32, %arg1: memref<8x16xf32, #tpu.memory_space<vmem>>, %arg2: memref<16x128xbf16, #tpu.memory_space<vmem>>, %arg3: memref<1x128xf32, #tpu.memory_space<vmem>>, %arg4: memref<128x128xbf16, #tpu.memory_space<vmem>>, %arg5: memref<1x128xf32, #tpu.memory_space<vmem>>, %arg6: memref<8x128xf32, #tpu.memory_space<vmem>>) attributes {dimension_semantics = [#tpu.dimension_semantics<parallel>], iteration_bounds = array<i64: 2>, scalar_prefetch = 0 : i64, scratch_operands = 0 : i64, tpu.core_type = #tpu.core_type<tc>, window_params = [{transform_indices = @transform_0, window_bounds = array<i64: 8, 16>}, {pipeline_mode = #tpu.pipeline_mode<synchronous>, transform_indices = @transform_1, window_bounds = array<i64: 16, 128>}, {pipeline_mode = #tpu.pipeline_mode<synchronous>, transform_indices = @transform_2, window_bounds = array<i64: 1, 128>}, {pipeline_mode = #tpu.pipeline_mode<synchronous>, transform_indices = @transform_3, window_bounds = array<i64: 128, 128>}, {pipeline_mode = #tpu.pipeline_mode<synchronous>, transform_indices = @transform_4, window_bounds = array<i64: 1, 128>}, {transform_indices = @transform_5, window_bounds = array<i64: 8, 128>}]} {
    %c0 = arith.constant 0 : index
    %c0_0 = arith.constant 0 : index
    %0 = vector.load %arg1[%c0, %c0_0] : memref<8x16xf32, #tpu.memory_space<vmem>>, vector<8x16xf32>
    %1 = arith.truncf %0 : vector<8x16xf32> to vector<8x16xbf16>
    %c0_1 = arith.constant 0 : index
    %c0_2 = arith.constant 0 : index
    %2 = vector.load %arg2[%c0_1, %c0_2] : memref<16x128xbf16, #tpu.memory_space<vmem>>, vector<16x128xbf16>
    %cst = arith.constant dense<0.000000e+00> : vector<8x128xf32>
    %3 = tpu.matmul %1, %2, %cst {dimension_numbers = #tpu.dot_dimension_numbers<[1], [0], [0], [1], [0, 0, 1, 1], [], []>} : vector<8x16xbf16>, vector<16x128xbf16>, vector<8x128xf32> -> vector<8x128xf32>
    %c0_3 = arith.constant 0 : index
    %c0_4 = arith.constant 0 : index
    %4 = vector.load %arg3[%c0_3, %c0_4] : memref<1x128xf32, #tpu.memory_space<vmem>>, vector<1x128xf32>
    %5 = vector.broadcast %4 : vector<1x128xf32> to vector<8x128xf32>
    %6 = arith.addf %3, %5 : vector<8x128xf32>
    %cst_5 = arith.constant 0.000000e+00 : f32
    %7 = vector.broadcast %cst_5 : f32 to vector<8x128xf32>
    %8 = arith.maximumf %6, %7 : vector<8x128xf32>
    %9 = arith.truncf %8 : vector<8x128xf32> to vector<8x128xbf16>
    %c0_6 = arith.constant 0 : index
    %c0_7 = arith.constant 0 : index
    %10 = vector.load %arg4[%c0_6, %c0_7] : memref<128x128xbf16, #tpu.memory_space<vmem>>, vector<128x128xbf16>
    %cst_8 = arith.constant dense<0.000000e+00> : vector<8x128xf32>
    %11 = tpu.matmul %9, %10, %cst_8 {dimension_numbers = #tpu.dot_dimension_numbers<[1], [0], [0], [1], [0, 0, 1, 1], [], []>} : vector<8x128xbf16>, vector<128x128xbf16>, vector<8x128xf32> -> vector<8x128xf32>
    %c0_9 = arith.constant 0 : index
    %c0_10 = arith.constant 0 : index
    %12 = vector.load %arg5[%c0_9, %c0_10] : memref<1x128xf32, #tpu.memory_space<vmem>>, vector<1x128xf32>
    %13 = vector.broadcast %12 : vector<1x128xf32> to vector<8x128xf32>
    %14 = arith.addf %11, %13 : vector<8x128xf32>
    %15 = arith.negf %14 : vector<8x128xf32>
    %16 = math.exp %15 : vector<8x128xf32>
    %cst_11 = arith.constant 1.000000e+00 : f32
    %17 = vector.broadcast %cst_11 : f32 to vector<8x128xf32>
    %18 = arith.addf %17, %16 : vector<8x128xf32>
    %19 = arith.divf %17, %18 : vector<8x128xf32>
    %c0_12 = arith.constant 0 : index
    %c0_13 = arith.constant 0 : index
    %20 = vector.load %arg6[%c0_12, %c0_13] : memref<8x128xf32, #tpu.memory_space<vmem>>, vector<8x128xf32>
    tpu.vector_store %arg6[%c0_12, %c0_13], %19 {strides = array<i32>} : memref<8x128xf32, #tpu.memory_space<vmem>>, vector<8x128xf32>,
    return
  }
  func.func @transform_0(%arg0: i32) -> (i32, i32) {
    %c0_i32 = arith.constant 0 : i32
    %c0_i32_0 = arith.constant 0 : i32
    return %arg0, %c0_i32 : i32, i32
  }
  func.func @transform_1(%arg0: i32) -> (i32, i32) {
    %c0_i32 = arith.constant 0 : i32
    %c0_i32_0 = arith.constant 0 : i32
    %c0_i32_1 = arith.constant 0 : i32
    return %c0_i32, %c0_i32_0 : i32, i32
  }
  func.func @transform_2(%arg0: i32) -> (i32, i32) {
    %c0_i32 = arith.constant 0 : i32
    %c0_i32_0 = arith.constant 0 : i32
    %c0_i32_1 = arith.constant 0 : i32
    return %c0_i32, %c0_i32_0 : i32, i32
  }
  func.func @transform_3(%arg0: i32) -> (i32, i32) {
    %c0_i32 = arith.constant 0 : i32
    %c0_i32_0 = arith.constant 0 : i32
    %c0_i32_1 = arith.constant 0 : i32
    return %c0_i32, %c0_i32_0 : i32, i32
  }
  func.func @transform_4(%arg0: i32) -> (i32, i32) {
    %c0_i32 = arith.constant 0 : i32
    %c0_i32_0 = arith.constant 0 : i32
    %c0_i32_1 = arith.constant 0 : i32
    return %c0_i32, %c0_i32_0 : i32, i32
  }
  func.func @transform_5(%arg0: i32) -> (i32, i32) {
    %c0_i32 = arith.constant 0 : i32
    %c0_i32_0 = arith.constant 0 : i32
    return %arg0, %c0_i32 : i32, i32
  }
}

</mosaic_0001>

<bundles_post_ra>
// kernel: tpu_custom_call.1
= control target key start
LH: loop header
LB: loop body
LE: loop exit
PB: predicated region body
PF: predicated region fallthrough
CT: control target
= control target key end

     0   :  { %10 = vsyncpa [#allocation3], 0  ;;  %s1004_s0 = inlined_call_operand.hbm [shape: f32[16,16], index: 0, kind: input, shape index: {}]   ;;  %s1005_s1 = inlined_call_operand.hbm [shape: bf16[16,128], index: 1, kind: input, shape index: {}]   ;;  %s1006_s2 = inlined_call_operand.vmem [shape: f32[1,128], index: 2, kind: input, shape index: {}]   ;;  %s1007_s3 = inlined_call_operand.hbm [shape: bf16[128,128], index: 3, kind: input, shape index: {}]   ;;  %s1008_s4 = inlined_call_operand.vmem [shape: f32[1,128], index: 4, kind: input, shape index: {}]   ;;  %s1009_s5 = inlined_call_operand.hbm [shape: f32[16,128], index: 5, kind: output, shape index: {}]  }
   0x1   :  { %12 = vsyncpa [#allocation3 + $0x1], 0 }
   0x2   :  { %13 = vsyncpa [#allocation6], 0 }
   0x3   :  { %14 = vsyncpa [#allocation4], 0 }
   0x4   :  { %16 = vsyncpa [#allocation4 + $0x1], 0  ;;  %s849_s18 = smov 0   ;;  %s851_s19 = smov 0  }
   0x5   :  { %s853_s20 = smov 0   ;;  %s855_s21 = smov 0  }
   0x6 LB: > { %s174_s24 = sshll.u32 %s1005_s1, 4  ;;  %s873_s25 = sadd.s32 4294967295, %s813_s21   ;;  %s813_s21 = sphi %s855_s21, %s1020_s21   ;;  %s809_s20 = sphi %s853_s20, %s1019_s20   ;;  %s805_s19 = sphi %s851_s19, %s1018_s19   ;;  %s801_s18 = sphi %s849_s18, %s1017_s18   ;;  %s175_s24 = int_to_ptr.hbm [resolvable:$true] %s174_s24 }
   0x7   : > { %p516_p0 = scmp.ge.s32.totalorder %s813_s21, 1  ;;  %p43_p1 = scmp.eq.s32.totalorder %s873_s25, 0 }
   0x8   : > { %p163_p2 = scmp.lt.s32.totalorder %s813_s21, 3  ;;  %s815_s27 = smov [#allocation5]  }
   0x9   : > { %s176_s28 = sshll.u32 %s815_s27, 4  ;;  %s191_s6 = sshll.u32 %s1007_s3, 4  ;;  %s177_s28 = int_to_ptr.vmem [resolvable:$true] %s176_s28  ;;  %s192_s6 = int_to_ptr.hbm [resolvable:$true] %s191_s6 }
   0xa   : > { %p878_p3 = pnand %p516_p0, %p163_p2  ;;  %s816_s7 = smov [#allocation7]  }
   0xb   : > { %s193_s8 = sshll.u32 %s816_s7, 4  ;;  %s817_s9 = smov 64   ;;  %s194_s8 = int_to_ptr.vmem [resolvable:$true] %s193_s8 }
   0xc   : > { %p590_p4 = pneg %p878_p3  ;;  %s818_s10 = smov 4  }
   0xd   : > { %s515_s11 = sadd.s32 4294967294, %s813_s21   ;;  %s892_s12 = sadd.s32 1, %s813_s21  }
   0xe   : > { %p591_p6 = pnand %p590_p4, %p43_p1  ;;  %s26_s13 = ssub.s32 %s813_s21, %s892_s12 }
   0xf   : > { %s29_s14 = sadd.s32 1, %s809_s20  ;;  %p27_p7 = scmp.eq.s32.totalorder %s26_s13, 0 }
  0x10   : > { %593 = dma.hbm_to_vmem [thread:$0]  (!%p591_p6), %s175_s24, 128, %s177_s28, [#allocation6], %s817_s9, %s817_s9, %s818_s10  }
  0x11   : > { %596 = dma.hbm_to_vmem [thread:$0]  (!%p591_p6), %s192_s6, 1024, %s194_s8, [#allocation6], %s817_s9, %s817_s9, %s818_s10  }
  0x12   : > { %p36_p8 = scmp.ne.s32.totalorder %s809_s20, %s805_s19  ;;  %p37_p9 = scmp.eq.s32.totalorder %s813_s21, 0 }
  0x13   : > { %p42_p10 = scmp.ne.s32.totalorder %s805_s19, %s801_s18  ;;  %p150_p13 = scmp.eq.s32.totalorder %s873_s25, 1 }
  0x14   : > { %s903_s15 = scalar_select %p27_p7, %s809_s20, %s29_s14  }
  0x15   : > { %p905_p11 = por %p37_p9, %p36_p8  ;;  %p911_p12 = por %p43_p1, %p42_p10 }
  0x16   : > { %p156_p0 = scmp.eq.s32.totalorder %s515_s11, 1  ;;  %p607_p2 = scmp.lt.s32.totalorder %s813_s21, 2 }
  0x17   : > { %s210_s22 = sand.u32 1, %s809_s20   ;;  %p918_p4 = por %p150_p13, %p36_p8 }
  0x18   : > { %p922_p6 = por %p156_p0, %p42_p10  ;;  %s520_s27 = sshll.u32 %s210_s22, 3 }
  0x19   : > { %s521_s28 = sshll.u32 %s813_s21, 3  ;;  %s214_s7 = scalar_lea.vmem [#allocation2], %s520_s27 }
  0x1a   : > { %s218_s6 = scalar_lea.hbm %s1004_s0, %s521_s28  ;;  %s222_s8 = sshll.u32 %s214_s7, 4  ;;  %s223_s8 = int_to_ptr.vmem [resolvable:$true] %s222_s8 }
  0x1b   : > { %s220_s9 = sshll.u32 %s218_s6, 4  ;;  %p932_p7 = pnand %p607_p2, %p905_p11  ;;  %s221_s9 = int_to_ptr.hbm [resolvable:$true] %s220_s9 }
  0x1c   : > { %s211_s11 = scalar_lea.sflag [#allocation3], %s210_s22  ;;  %s713_s13 = sshra.s32 %s221_s9, 4  ;;  %s714_s13 = int_to_ptr.hbm [resolvable:$true] %s713_s13 }
  0x1d   : > { %s715_s14 = scalar_lea.hbm %s714_s13, 8  ;;  %p717_p9 = pneg %p932_p7 }
  0x1e   : > { %p716_p8 = scmp.ne.s32.totalorder %s714_s13, %s715_s14  ;;  %s720_s29 = scalar_lea.hbm %s1004_s0, 16 }
  0x1f   : > { %p721_p11 = scmp.lt.s32.totalorder %s714_s13, %s1004_s0  ;;  %p722_p0 = scmp.lt.s32.totalorder %s720_s29, %s715_s14 }
  0x20   : > { %p718_p10 = pnand %p717_p9, %p716_p8 }
  0x21   : > { %p723_p2 = por %p722_p0, %p721_p11 }
  0x22   : > { %p719_p13 = pneg %p718_p10 }
  0x24   : > { %p724_p5 = pnand %p723_p2, %p719_p13 }
  0x26   : > { %727 = shalt.err (!%p724_p5)
}
  0x27   : > { %600 = dma.hbm_to_vmem [thread:$0]  (!%p932_p7), %s221_s9, 128, %s223_s8, %s211_s11  }
  0x28   : > { %231 = sbr.rel (%p878_p3) target bundleno = 343 (0x157), region = 40  ;;  %s949_s22 = sand.u32 (!%p878_p3), 1, %s805_s19  }
  0x29   : > { %s523_s6 = sshll.u32 (!%p878_p3), %s949_s22, 3  ;;  %s234_s7 = scalar_lea.sflag (!%p878_p3), [#allocation3], %s949_s22 }
  0x2a   : > { %s237_s13 = scalar_lea.vmem (!%p878_p3), [#allocation2], %s523_s6 }
  0x2d   : > { %788 = dma.done.wait (%p911_p12), %s234_s7, 128  }
  0x2e   : > { %790 = vsyncadd (%p911_p12), %s234_s7, 4294967168 }
  0x2f   : > { %792 = dma.done.wait (%p43_p1), [#allocation6], 1152  }
  0x30   : > { %794 = vsyncadd (%p43_p1), [#allocation6], 4294966144  ;;  %v569_v0 = vld [vmem:[#allocation5] sm:$0xff]  ;;  %v276_v1 = vld [vmem:[%s237_s13] sm:$0xff]  ;;  %vm290_vm0 = vcmask 130048   ;;  %s566_s10 = sshll.u32 %s873_s25, 3 }
  0x31   : > { %v577_v2 = vld [vmem:[#allocation7 + $0x38] sm:$0xff]  ;;  %v277_v3 = vpack.c.bf16 %v276_v1, %v276_v1  ;;  %301 = vmatpush.bf16.msra.mxu0 %v569_v0  ;;  %v576_v4 = vld [vmem:[#allocation7 + $0x30] sm:$0xff]  ;;  %v575_v5 = vld [vmem:[#allocation7 + $0x28] sm:$0xff]  ;;  %s421_s27 = scalar_lea.hbm %s1009_s5, %s566_s10  ;;  %s274_s28 = scalar_lea.vmem [#allocation8], %s523_s6 }
  0x32   : > { %377 = vmatpush.bf16.msra.mxu1 %v577_v2  ;;  %v574_v6 = vld [vmem:[#allocation7 + $0x20] sm:$0xff]  ;;  %v573_v7 = vld [vmem:[#allocation7 + $0x18] sm:$0xff]  ;;  %v572_v8 = vld [vmem:[#allocation7 + $0x10] sm:$0xff]  ;;  %s423_s29 = sshll.u32 %s274_s28, 4  ;;  %s425_s30 = sshll.u32 %s421_s27, 4  ;;  %s424_s29 = int_to_ptr.vmem [resolvable:$true] %s423_s29  ;;  %s426_s30 = int_to_ptr.hbm [resolvable:$true] %s425_s30 }
  0x33   : > { %v571_v9 = vld [vmem:[#allocation7 + $0x8] sm:$0xff]  ;;  %v570_v10 = vld [vmem:[#allocation7] sm:$0xff]  ;;  %s411_s25 = scalar_lea.sflag [#allocation4], %s949_s22  ;;  %s757_s16 = sshra.s32 %s426_s30, 4  ;;  %s758_s16 = int_to_ptr.hbm [resolvable:$true] %s757_s16 }
  0x34   : > { %531 = vmatmul.msk.bf16.vlgmr.msra.gmra.mxu0 %vm290_vm0, %v277_v3  ;;  %v647_v11 = vld [vmem:[%s1006_s2] ss:$0 sm:$0xff]  ;;  %s759_s7 = scalar_lea.hbm %s758_s16, 8  ;;  %s763_s26 = scalar_lea.hbm %s1009_s5, 16 }
  0x35   : > { %v648_v17 = vld [vmem:[%s1008_s4] ss:$0 sm:$0xff]  ;;  %p760_p1 = scmp.ne.s32.totalorder %s758_s16, %s759_s7  ;;  %p764_p12 = scmp.lt.s32.totalorder %s758_s16, %s1009_s5 }
  0x36   : > { %378 = vmatpush.bf16.msra.mxu1 %v576_v4  ;;  %p765_p7 = scmp.lt.s32.totalorder %s763_s26, %s759_s7 }
  0x37   : > { %p761_p3 = pnand %p760_p1, %p918_p4 }
  0x38   : > { %p766_p8 = por %p765_p7, %p764_p12 }
  0x39   : > { %p762_p5 = pneg %p761_p3 }
  0x3a   : > { %379 = vmatpush.bf16.msra.mxu1 %v575_v5 }
  0x3b   : > { %p767_p9 = pnand %p766_p8, %p762_p5 }
  0x3e   : > { %380 = vmatpush.bf16.msra.mxu1 %v574_v6 }
  0x42   : > { %381 = vmatpush.bf16.msra.mxu1 %v573_v7 }
  0x46   : > { %382 = vmatpush.bf16.msra.mxu1 %v572_v8 }
  0x4a   : > { %383 = vmatpush.bf16.msra.mxu1 %v571_v9 }
  0x4e   : > { %384 = vmatpush.bf16.msra.mxu1 %v570_v10 }
  0xb1   : > { %v303_v12 = vpop.f32.mrf.mxu0 }
  0xb2   : > { %v304_v13 = vadd.f32 %v647_v11, %v303_v12 }
  0xb4   : > { %v307_v14 = vmax.f32 %v304_v13, 0.0 }
  0xb6   : > { %v308_v15 = vpack.c.bf16 %v307_v14, %v307_v14 }
  0xb8   : > { %385 = vmatmul.bf16.vlgmr.msra.gmra.mxu1 %v308_v15 }
  0xb9   : > { %v305_v16 = vpop.f32.mrf.mxu0 }
 0x135   : > { %v386_v18 = vpop.f32.mrf.mxu1 }
 0x136   : > { %v387_v19 = vadd.f32 %v648_v17, %v386_v18 }
 0x138   : > { %v564_v20 = vmul.f32 -1.442695, %v387_v19 }
 0x13a   : > { %649 = vpow2.f32 %v564_v20 }
 0x13d   : > { %v388_v21 = vpop.f32.mrf.mxu1 }
 0x140   : > { %v650_v22 = vpop.eup %649 }
 0x141   : > { %v393_v23 = vadd.f32 1.0, %v650_v22 }
 0x143   : > { %651 = vrcp.f32 %v393_v23  ;;  %v405_v27 = vand.u32 2147483648, %v393_v23  ;;  %v403_v29 = vand.u32 2147483647, %v393_v23  ;;  %vm399_vm2 = vweird.f32 %v393_v23 }
 0x145   : > { %v406_v31 = vor.u32 1.1754944e-38, %v405_v27  ;;  %vm404_vm4 = vcmp.eq.f32.partialorder %v403_v29, 8.507059e+37 }
 0x149   : > { %v652_v24 = vpop.eup %651 }
 0x14a   : > { %v395_v25 = vmul.f32 %v652_v24, %v393_v23  ;;  %vm400_vm1 = vweird.f32 %v652_v24 }
 0x14b   : > { %vm401_vm3 = vmor %vm399_vm2, %vm400_vm1 }
 0x14c   : > { %v396_v26 = vsub.f32 1.0, %v395_v25 }
 0x14e   : > { %v397_v28 = vmul.f32 %v652_v24, %v396_v26 }
 0x150   : > { %v398_v30 = vadd.f32 %v652_v24, %v397_v28 }
 0x152   : > { %v402_v32 = vsel %vm401_vm3, %v652_v24, %v398_v30 }
 0x153   : > { %v407_v33 = vsel %vm404_vm4, %v406_v31, %v402_v32 }
 0x154   : > { %409 = vst [vmem:[%s274_s28] sm:$0xff] %v407_v33 }
 0x155   : > { %770 = shalt.err (!%p767_p9)
}
 0x156   : > { %588 = dma.vmem_to_hbm [thread:$0]  (%p918_p4), %s424_s29, 128, %s426_s30, %s411_s25  }
 0x157 PF: > { %s437_s22 = sand.u32 1, %s801_s18   ;;  %p1016_p10 = scmp.ge.s32.totalorder %s813_s21, 2 }
 0x158   : > { %s438_s9 = scalar_lea.sflag [#allocation4], %s437_s22 }
 0x159   : > { %p602_p13 = pnand %p1016_p10, %p922_p6 }
 0x15b   : > { %p603_p11 = pneg %p602_p13 }
 0x15d   : > { %796 = dma.done.wait (%p603_p11), %s438_s9, 128  }
 0x15e   : > { %798 = vsyncadd (%p603_p11), %s438_s9, 4294967168  ;;  %p19_p0 = scmp.ge.s32.totalorder %s892_s12, 4   ;;  %s1017_s18 = smov %s805_s19 }
 0x15f   : > { %s1018_s19 = smov %s809_s20  ;;  %s1019_s20 = smov %s903_s15 }
 0x160   : > { %s1020_s21 = smov %s892_s12  ;;  %21 = sbr.rel (!%p19_p0) target bundleno = 6 (0x6), region = 93 }
 0x165   :  { %444 = vsyncpa [#allocation3], 1 }
 0x166   :  { %446 = vsyncpa [#allocation3 + $0x1], 1 }
 0x167   :  { %447 = vsyncpa [#allocation6], 1 }
 0x168   :  { %448 = vsyncpa [#allocation4], 1 }
 0x169   :  { %450 = vsyncpa [#allocation4 + $0x1], 1 }

</bundles_post_ra>
